<compile_context>
chip_gen: v6e
topology: v6e:2x2x1
jax: 0.10.0
libtpu: 0.0.40
codegen_flags: <defaults>
</compile_context>

<pallas_src>
import math

import jax
import jax.numpy as jnp
from jax.experimental import pallas as pl
from jax.experimental.pallas import tpu as pltpu


_NEG_BIG = -1e30          # finite "-inf": pad-column bias / running-max init
_VMEM_BUDGET = 40 << 20   # per-step VMEM target (headroom under v7x's 64 MiB)


def _round_up(a, b):
    return (a + b - 1) // b * b


# ---------------------------------------------------------------------------
# Pass 1: per-row logsumexp over vocab tiles (online max / sum accumulators).
# ---------------------------------------------------------------------------
def _lse_kernel(x_ref, wt_ref, b_ref, lse_ref, m_sc, l_sc):
    j = pl.program_id(1)

    @pl.when(j == 0)
    def _():
        m_sc[...] = jnp.full(m_sc.shape, _NEG_BIG, jnp.float32)
        l_sc[...] = jnp.zeros(l_sc.shape, jnp.float32)

    # bf16 x bf16 -> f32 accumulation on the MXU; softmax math stays f32.
    logits = jnp.dot(x_ref[...], wt_ref[...],
                     preferred_element_type=jnp.float32)
    logits = logits + b_ref[...]                 # (1, tv) broadcasts over rows

    m_tile = jnp.max(logits, axis=-1, keepdims=True)
    m_new = jnp.maximum(m_sc[...], m_tile)
    alpha = jnp.exp(m_sc[...] - m_new)
    l_sc[...] = alpha * l_sc[...] + jnp.sum(jnp.exp(logits - m_new),
                                            axis=-1, keepdims=True)
    m_sc[...] = m_new

    @pl.when(j == pl.num_programs(1) - 1)
    def _():
        lse_ref[...] = m_sc[...] + jnp.log(l_sc[...])


# ---------------------------------------------------------------------------
# Pass 2: recompute the logits tile and write log-probs (lane-dense store).
# ---------------------------------------------------------------------------
def _logprob_kernel(x_ref, wt_ref, b_ref, lse_ref, o_ref):
    logits = jnp.dot(x_ref[...], wt_ref[...],
                     preferred_element_type=jnp.float32)
    logits = logits + b_ref[...]
    o_ref[...] = (logits - lse_ref[...]).astype(o_ref.dtype)


# ---------------------------------------------------------------------------
# Tiling helpers
# ---------------------------------------------------------------------------
def _choose_block_rows(n_rows, target, num_cores):
    """Prefer `target` rows (fills the 256-wide MXU on v6e/v7x).  For small N
    use one sublane-aligned block; split in two only when >=2 TensorCores
    (v7x) can actually use the 'parallel' row axis."""
    if n_rows >= target:
        return target
    np8 = _round_up(n_rows, 8)
    if num_cores >= 2 and np8 >= 16 and (np8 // 2) % 8 == 0:
        return np8 // 2
    return np8


def _vmem_bytes(br, d, tv, in_bytes, out_bytes):
    """Conservative per-step VMEM estimate (all pipelined blocks x2)."""
    w_tile = d * tv * in_bytes
    x_tile = br * d * in_bytes
    b_tile = tv * 4
    o_tile = br * tv * out_bytes
    lse_tile = br * 4
    scratch = 2 * br * 4
    return 2 * (w_tile + x_tile + b_tile + o_tile + lse_tile) + scratch


def _choose_block_vocab(vp, d, br, target, in_bytes, out_bytes):
    """Largest multiple of 128 that divides the padded vocab, is <= target,
    and keeps the per-step VMEM estimate within budget (shrink the vocab
    tile, never the row block)."""
    target = min(_round_up(max(target, 128), 128), vp)
    best = 128
    c = 128
    while c <= target:
        if vp % c == 0 and _vmem_bytes(br, d, c, in_bytes, out_bytes) <= _VMEM_BUDGET:
            best = c
        c += 128
    return best


# ---------------------------------------------------------------------------
# Wrapper
# ---------------------------------------------------------------------------
def generator_forward(x, weight, bias, *,
                      block_rows=256,
                      block_vocab=2048,
                      num_cores=1,
                      mxu_dtype=jnp.bfloat16,
                      out_dtype=None):
    """log_softmax(x @ weight.T + bias, axis=-1).

    x: [B, L, d_model]; weight: [vocab, d_model] (nn.Linear layout); bias: [vocab].
    In a real module, pre-store the weight as (d_model, vocab) in `mxu_dtype`
    so the transpose/cast below is done once, not per call.
    """
    B, L, D = x.shape
    V, D2 = weight.shape
    assert D == D2, "weight must be (vocab, d_model)"
    N = B * L
    if out_dtype is None:
        out_dtype = x.dtype
    in_dtype = mxu_dtype if mxu_dtype is not None else x.dtype

    # ---- padded sizes and tile shapes --------------------------------------
    Vp = _round_up(V, 128)                       # lane-dense vocab tiles
    br = _choose_block_rows(N, block_rows, num_cores)
    Np = _round_up(N, br)
    in_bytes = jnp.dtype(in_dtype).itemsize
    out_bytes = jnp.dtype(out_dtype).itemsize
    tv = _choose_block_vocab(Vp, D, br, block_vocab, in_bytes, out_bytes)
    nr, nv = Np // br, Vp // tv
    vmem_limit = int(min(max(2 * _vmem_bytes(br, D, tv, in_bytes, out_bytes),
                             32 << 20), 64 << 20))

    # ---- flatten, transpose-once, cast, pad (XLA side, outside the kernel) --
    x_flat = x.reshape(N, D).astype(in_dtype)
    wt = weight.T.astype(in_dtype)               # (D, V), transposed once
    b_row = bias.astype(jnp.float32)
    if Np != N:
        x_flat = jnp.pad(x_flat, ((0, Np - N), (0, 0)))
    if Vp != V:
        wt = jnp.pad(wt, ((0, 0), (0, Vp - V)))
        b_row = jnp.pad(b_row, (0, Vp - V), constant_values=_NEG_BIG)
    b2 = b_row.reshape(1, Vp)

    grid = (nr, nv)
    x_spec = pl.BlockSpec((br, D), lambda i, j: (i, 0))
    w_spec = pl.BlockSpec((D, tv), lambda i, j: (0, j))
    b_spec = pl.BlockSpec((1, tv), lambda i, j: (0, j))
    lse_spec = pl.BlockSpec((br, 1), lambda i, j: (i, 0))

    # ---- pass 1: per-row logsumexp (vocab axis is the reduction: last,
    #      "arbitrary"; accumulators live in VMEM scratch) --------------------
    lse = pl.pallas_call(
        _lse_kernel,
        out_shape=jax.ShapeDtypeStruct((Np, 1), jnp.float32),
        grid_spec=pltpu.PrefetchScalarGridSpec(
            num_scalar_prefetch=0,
            grid=grid,
            in_specs=[x_spec, w_spec, b_spec],
            out_specs=lse_spec,
            scratch_shapes=[pltpu.VMEM((br, 1), jnp.float32),
                            pltpu.VMEM((br, 1), jnp.float32)],
        ),
        compiler_params=pltpu.CompilerParams(
            dimension_semantics=("parallel", "arbitrary"),
            vmem_limit_bytes=vmem_limit),
    )(x_flat, wt, b2)

    # ---- pass 2: log-probs tile-by-tile (fully parallel, lane-dense stores) --
    out_flat = pl.pallas_call(
        _logprob_kernel,
        out_shape=jax.ShapeDtypeStruct((Np, Vp), out_dtype),
        grid_spec=pltpu.PrefetchScalarGridSpec(
            num_scalar_prefetch=0,
            grid=grid,
            in_specs=[x_spec, w_spec, b_spec, lse_spec],
            out_specs=pl.BlockSpec((br, tv), lambda i, j: (i, j)),
        ),
        compiler_params=pltpu.CompilerParams(
            dimension_semantics=("parallel", "parallel"),
            vmem_limit_bytes=vmem_limit),
    )(x_flat, wt, b2, lse)

    return out_flat[:N, :V].reshape(B, L, V)


# ---------------------------------------------------------------------------
# Plain-JAX references
# ---------------------------------------------------------------------------
def _reference(x, weight, bias, mxu_dtype=jnp.bfloat16):
    if mxu_dtype is not None:
        logits = jnp.einsum('bld,vd->blv',
                            x.astype(mxu_dtype), weight.astype(mxu_dtype),
                            preferred_element_type=jnp.float32)
    else:
        logits = jnp.einsum('bld,vd->blv', x, weight,
                            preferred_element_type=jnp.float32)
    logits = logits + bias.astype(jnp.float32)
    return jax.nn.log_softmax(logits, axis=-1)


if __name__ == "__main__":
    # Small shapes consistent with the module (d_model/vocab scaled down).
    # vocab=1000 is deliberately NOT a multiple of 128, to exercise the
    # pad-to-128 + (-1e30)-bias masking path.
    B, L, d_model, vocab = 2, 8, 32, 1000

    key = jax.random.PRNGKey(0)
    kx, kw, kb = jax.random.split(key, 3)
    x = jax.random.normal(kx, (B, L, d_model), dtype=jnp.float32)

    bound = 1.0 / math.sqrt(d_model)            # nn.Linear-style uniform init
    weight = jax.random.uniform(kw, (vocab, d_model), jnp.float32, -bound, bound)
    bias = jax.random.uniform(kb, (vocab,), jnp.float32, -bound, bound)

    ref_bf16 = _reference(x, weight, bias, mxu_dtype=jnp.bfloat16)
    ref_f32 = _reference(x, weight, bias, mxu_dtype=None)

    configs = [
        # single row block, single vocab tile (small-size fast path)
        dict(block_rows=256, block_vocab=2048),
        # two vocab tiles -> exercises the online logsumexp accumulator
        dict(block_rows=256, block_vocab=512),
        # multiple row blocks + 4 vocab tiles + 2-core row-split hint (v7x)
        dict(block_rows=8, block_vocab=256, num_cores=2),
    ]
    for cfg in configs:
        out = jax.block_until_ready(generator_forward(x, weight, bias, **cfg))
        assert out.shape == (B, L, vocab)
        assert jnp.allclose(out, ref_bf16, atol=1e-4, rtol=1e-4), \
            f"mismatch vs bf16-matched reference for {cfg}"
        assert jnp.allclose(out, ref_f32, atol=5e-2, rtol=5e-2), \
            f"mismatch vs f32 reference for {cfg}"

    # bf16 output variant (halves the dominant HBM writeback at real sizes).
    out_bf16 = jax.block_until_ready(
        generator_forward(x, weight, bias, block_vocab=512,
                          out_dtype=jnp.bfloat16))
    assert out_bf16.dtype == jnp.bfloat16
    assert jnp.allclose(out_bf16.astype(jnp.float32), ref_bf16,
                        atol=5e-2, rtol=5e-2), "mismatch for bf16 output"

    print("KERNEL_OK")
</pallas_src>

<mosaic_0001>
module attributes {stable_mosaic.version = 11 : i64} {
  func.func @_lse_kernel(%arg0: i32, %arg1: i32, %arg2: memref<16x32xbf16, #tpu.memory_space<vmem>>, %arg3: memref<32x1024xbf16, #tpu.memory_space<vmem>>, %arg4: memref<1x1024xf32, #tpu.memory_space<vmem>>, %arg5: memref<16x1xf32, #tpu.memory_space<vmem>>, %arg6: memref<16x1xf32, #tpu.memory_space<vmem>>, %arg7: memref<16x1xf32, #tpu.memory_space<vmem>>) attributes {dimension_semantics = [#tpu.dimension_semantics<parallel>, #tpu.dimension_semantics<arbitrary>], iteration_bounds = array<i64: 1, 1>, scalar_prefetch = 0 : i64, scratch_operands = 2 : i64, tpu.core_type = #tpu.core_type<tc>, window_params = [{transform_indices = @transform_0, window_bounds = array<i64: 16, 32>}, {transform_indices = @transform_1, window_bounds = array<i64: 32, 1024>}, {transform_indices = @transform_2, window_bounds = array<i64: 1, 1024>}, {transform_indices = @transform_3, window_bounds = array<i64: 16, 1>}]} {
    %c0_i32 = arith.constant 0 : i32
    %0 = arith.cmpi eq, %arg1, %c0_i32 : i32
    %1 = arith.extui %0 : i1 to i32
    %c0_i32_0 = arith.constant 0 : i32
    %2 = arith.cmpi ne, %1, %c0_i32_0 : i32
    scf.if %2 {
      %cst_20 = arith.constant -1.000000e+30 : f32
      %29 = vector.broadcast %cst_20 : f32 to vector<16x1xf32>
      %c0_21 = arith.constant 0 : index
      %c0_22 = arith.constant 0 : index
      %30 = vector.load %arg6[%c0_21, %c0_22] : memref<16x1xf32, #tpu.memory_space<vmem>>, vector<16x1xf32>
      tpu.vector_store %arg6[%c0_21, %c0_22], %29 {strides = array<i32>} : memref<16x1xf32, #tpu.memory_space<vmem>>, vector<16x1xf32>,
      %cst_23 = arith.constant 0.000000e+00 : f32
      %31 = vector.broadcast %cst_23 : f32 to vector<16x1xf32>
      %c0_24 = arith.constant 0 : index
      %c0_25 = arith.constant 0 : index
      %32 = vector.load %arg7[%c0_24, %c0_25] : memref<16x1xf32, #tpu.memory_space<vmem>>, vector<16x1xf32>
      tpu.vector_store %arg7[%c0_24, %c0_25], %31 {strides = array<i32>} : memref<16x1xf32, #tpu.memory_space<vmem>>, vector<16x1xf32>,
    } else {
    }
    %c0 = arith.constant 0 : index
    %c0_1 = arith.constant 0 : index
    %3 = vector.load %arg2[%c0, %c0_1] : memref<16x32xbf16, #tpu.memory_space<vmem>>, vector<16x32xbf16>
    %c0_2 = arith.constant 0 : index
    %c0_3 = arith.constant 0 : index
    %4 = vector.load %arg3[%c0_2, %c0_3] : memref<32x1024xbf16, #tpu.memory_space<vmem>>, vector<32x1024xbf16>
    %cst = arith.constant dense<0.000000e+00> : vector<16x1024xf32>
    %5 = tpu.matmul %3, %4, %cst {dimension_numbers = #tpu.dot_dimension_numbers<[1], [0], [0], [1], [0, 0, 1, 1], [], []>} : vector<16x32xbf16>, vector<32x1024xbf16>, vector<16x1024xf32> -> vector<16x1024xf32>
    %c0_4 = arith.constant 0 : index
    %c0_5 = arith.constant 0 : index
    %6 = vector.load %arg4[%c0_4, %c0_5] : memref<1x1024xf32, #tpu.memory_space<vmem>>, vector<1x1024xf32>
    %7 = vector.broadcast %6 : vector<1x1024xf32> to vector<16x1024xf32>
    %8 = arith.addf %5, %7 : vector<16x1024xf32>
    %cst_6 = arith.constant dense<0xFF800000> : vector<16xf32>
    %9 = vector.multi_reduction <maximumf>, %8, %cst_6 [1] : vector<16x1024xf32> to vector<16xf32>
    %10 = vector.shape_cast %9 : vector<16xf32> to vector<16x1xf32>
    %c0_7 = arith.constant 0 : index
    %c0_8 = arith.constant 0 : index
    %11 = vector.load %arg6[%c0_7, %c0_8] : memref<16x1xf32, #tpu.memory_space<vmem>>, vector<16x1xf32>
    %12 = arith.maximumf %11, %10 : vector<16x1xf32>
    %c0_9 = arith.constant 0 : index
    %c0_10 = arith.constant 0 : index
    %13 = vector.load %arg6[%c0_9, %c0_10] : memref<16x1xf32, #tpu.memory_space<vmem>>, vector<16x1xf32>
    %14 = arith.subf %13, %12 : vector<16x1xf32>
    %15 = math.exp %14 : vector<16x1xf32>
    %c0_11 = arith.constant 0 : index
    %c0_12 = arith.constant 0 : index
    %16 = vector.load %arg7[%c0_11, %c0_12] : memref<16x1xf32, #tpu.memory_space<vmem>>, vector<16x1xf32>
    %17 = arith.mulf %15, %16 : vector<16x1xf32>
    %18 = vector.broadcast %12 : vector<16x1xf32> to vector<16x1024xf32>
    %19 = arith.subf %8, %18 : vector<16x1024xf32>
    %20 = math.exp %19 : vector<16x1024xf32>
    %cst_13 = arith.constant dense<0.000000e+00> : vector<16xf32>
    %21 = vector.multi_reduction <add>, %20, %cst_13 [1] : vector<16x1024xf32> to vector<16xf32>
    %22 = vector.shape_cast %21 : vector<16xf32> to vector<16x1xf32>
    %23 = arith.addf %17, %22 : vector<16x1xf32>
    %c0_14 = arith.constant 0 : index
    %c0_15 = arith.constant 0 : index
    %24 = vector.load %arg7[%c0_14, %c0_15] : memref<16x1xf32, #tpu.memory_space<vmem>>, vector<16x1xf32>
    tpu.vector_store %arg7[%c0_14, %c0_15], %23 {strides = array<i32>} : memref<16x1xf32, #tpu.memory_space<vmem>>, vector<16x1xf32>,
    %c0_16 = arith.constant 0 : index
    %c0_17 = arith.constant 0 : index
    %25 = vector.load %arg6[%c0_16, %c0_17] : memref<16x1xf32, #tpu.memory_space<vmem>>, vector<16x1xf32>
    tpu.vector_store %arg6[%c0_16, %c0_17], %12 {strides = array<i32>} : memref<16x1xf32, #tpu.memory_space<vmem>>, vector<16x1xf32>,
    %c0_i32_18 = arith.constant 0 : i32
    %26 = arith.cmpi eq, %arg1, %c0_i32_18 : i32
    %27 = arith.extui %26 : i1 to i32
    %c0_i32_19 = arith.constant 0 : i32
    %28 = arith.cmpi ne, %27, %c0_i32_19 : i32
    scf.if %28 {
      %c0_20 = arith.constant 0 : index
      %c0_21 = arith.constant 0 : index
      %29 = vector.load %arg6[%c0_20, %c0_21] : memref<16x1xf32, #tpu.memory_space<vmem>>, vector<16x1xf32>
      %c0_22 = arith.constant 0 : index
      %c0_23 = arith.constant 0 : index
      %30 = vector.load %arg7[%c0_22, %c0_23] : memref<16x1xf32, #tpu.memory_space<vmem>>, vector<16x1xf32>
      %31 = math.log %30 : vector<16x1xf32>
      %32 = arith.addf %29, %31 : vector<16x1xf32>
      %c0_24 = arith.constant 0 : index
      %c0_25 = arith.constant 0 : index
      %33 = vector.load %arg5[%c0_24, %c0_25] : memref<16x1xf32, #tpu.memory_space<vmem>>, vector<16x1xf32>
      tpu.vector_store %arg5[%c0_24, %c0_25], %32 {strides = array<i32>} : memref<16x1xf32, #tpu.memory_space<vmem>>, vector<16x1xf32>,
    } else {
    }
    return
  }
  func.func @transform_0(%arg0: i32, %arg1: i32) -> (i32, i32) {
    %c0_i32 = arith.constant 0 : i32
    %c0_i32_0 = arith.constant 0 : i32
    return %arg0, %c0_i32 : i32, i32
  }
  func.func @transform_1(%arg0: i32, %arg1: i32) -> (i32, i32) {
    %c0_i32 = arith.constant 0 : i32
    %c0_i32_0 = arith.constant 0 : i32
    return %c0_i32, %arg1 : i32, i32
  }
  func.func @transform_2(%arg0: i32, %arg1: i32) -> (i32, i32) {
    %c0_i32 = arith.constant 0 : i32
    %c0_i32_0 = arith.constant 0 : i32
    return %c0_i32, %arg1 : i32, i32
  }
  func.func @transform_3(%arg0: i32, %arg1: i32) -> (i32, i32) {
    %c0_i32 = arith.constant 0 : i32
    %c0_i32_0 = arith.constant 0 : i32
    return %arg0, %c0_i32 : i32, i32
  }
}

</mosaic_0001>

<bundles_post_ra>
// kernel: tpu_custom_call.1
= control target key start
LH: loop header
LB: loop body
LE: loop exit
PB: predicated region body
PF: predicated region fallthrough
CT: control target
= control target key end

     0   :  { %8 = vsyncpa [#allocation5], 0  ;;  %s805_s0 = inlined_call_operand.hbm [shape: bf16[16,32], index: 0, kind: input, shape index: {}]   ;;  %s806_s1 = inlined_call_operand.hbm [shape: bf16[32,1024], index: 1, kind: input, shape index: {}]   ;;  %s807_s2 = inlined_call_operand.hbm [shape: f32[1,1024], index: 2, kind: input, shape index: {}]   ;;  %s808_s3 = inlined_call_operand.vmem [shape: f32[16,1], index: 3, kind: output, shape index: {}]  }
   0x1   :  { %9 = vsyncpa [#allocation7], 0  ;;  %s658_s12 = smov [#allocation6]  }
   0x2   :  { %s27_s13 = sshll.u32 %s658_s12, 4  ;;  %s28_s13 = int_to_ptr.vmem [resolvable:$true] %s27_s13 }
   0x3   :  { %s602_s14 = scalar_lea.vmem %s28_s13, 2048  ;;  %p607_p1 = scmp.lt.s32.totalorder %s28_s13, %s28_s13 }
   0x4   :  { %p603_p0 = scmp.ne.s32.totalorder %s28_s13, %s602_s14  ;;  %p608_p2 = scmp.lt.s32.totalorder %s602_s14, %s602_s14 }
   0x6   :  { %p609_p3 = por %p608_p2, %p607_p1 }
   0x8   :  { %p610_p4 = pnand %p609_p3, %p603_p0 }
   0xa   :  { %613 = shalt.err (!%p610_p4)
}
   0xb   :  { %s659_s15 = smov 512   ;;  %s660_s16 = smov 32  }
   0xc   :  { %33 = dma.hbm_to_vmem [thread:$0]  %s806_s1, 2048, %s28_s13, [#allocation7], %s659_s15, %s659_s15, %s660_s16  }
   0xd   :  { %s661_s19 = smov [#allocation4]  }
   0xe   :  { %s15_s20 = sshll.u32 %s661_s19, 4  ;;  %s16_s20 = int_to_ptr.vmem [resolvable:$true] %s15_s20 }
   0xf   :  { %s622_s21 = scalar_lea.vmem %s16_s20, 128  ;;  %p627_p6 = scmp.lt.s32.totalorder %s16_s20, %s16_s20 }
  0x10   :  { %p623_p5 = scmp.ne.s32.totalorder %s16_s20, %s622_s21  ;;  %p628_p7 = scmp.lt.s32.totalorder %s622_s21, %s622_s21 }
  0x12   :  { %p629_p8 = por %p628_p7, %p627_p6 }
  0x14   :  { %p630_p9 = pnand %p629_p8, %p623_p5 }
  0x16   :  { %633 = shalt.err (!%p630_p9)
}
  0x17   :  { %s662_s22 = smov 64   ;;  %s663_s23 = smov 4  }
  0x18   :  { %21 = dma.hbm_to_vmem [thread:$0]  %s805_s0, 128, %s16_s20, [#allocation5], %s662_s22, %s662_s22, %s663_s23  }
  0x19   :  { %s664_s26 = smov [#allocation8]  }
  0x1a   :  { %s40_s27 = sshll.u32 %s664_s26, 4  ;;  %s41_s27 = int_to_ptr.vmem [resolvable:$true] %s40_s27 }
  0x1b   :  { %s642_s1 = scalar_lea.vmem %s41_s27, 128  ;;  %p647_p11 = scmp.lt.s32.totalorder %s41_s27, %s41_s27 }
  0x1c   :  { %p643_p10 = scmp.ne.s32.totalorder %s41_s27, %s642_s1  ;;  %p648_p12 = scmp.lt.s32.totalorder %s642_s1, %s642_s1 }
  0x1e   :  { %p649_p13 = por %p648_p12, %p647_p11 }
  0x20   :  { %p650_p0 = pnand %p649_p13, %p643_p10 }
  0x22   :  { %653 = shalt.err (!%p650_p0)
}
  0x23   :  { %43 = dma.hbm_to_vmem [thread:$0]  %s807_s2, 128, %s41_s27, [#allocation7]  }
  0x24   :  { %654 = dma.done.wait [#allocation5], 128  }
  0x25   :  { %655 = vsyncadd [#allocation5], 4294967168 }
  0x26   :  { %656 = dma.done.wait [#allocation7], 2176  }
  0x27   :  { %657 = vsyncadd [#allocation7], 4294965120  ;;  %v665_v0 = vmov 0   ;;  %v73_v1 = vld [vmem:[#allocation6 + $0x40] sm:$0xff]  ;;  %v74_v3 = vld [vmem:[#allocation6 + $0x48] sm:$0xff]  ;;  %vm208_vm0 = vcmask 261120   ;;  %v83_v35 = vlaneseq }
  0x28   :  { %244 = vmatprep.mubr.bf16.mxu0 %v665_v0  ;;  %287 = vmatprep.mubr.bf16.mxu1 %v665_v0  ;;  %v77_v2 = vld [vmem:[#allocation6 + $0x60] sm:$0xff]  ;;  %v78_v5 = vld [vmem:[#allocation6 + $0x68] sm:$0xff]  ;;  %v75_v15 = vld [vmem:[#allocation6 + $0x50] sm:$0xff]  ;;  %vm58_vm1 = vcmask 7168   ;;  %v666_v34 = vmov -1e+30  }
  0x29   :  { %551 = vset.pattern.permute.xlu1 %v665_v0  ;;  %552 = vset.pattern.permute.xlu0 %v665_v0  ;;  %v530_v4 = vcombine.high %v73_v1, %v77_v2  ;;  %v529_v6 = vcombine.low %v73_v1, %v77_v2  ;;  %v65_v7 = vld [vmem:[#allocation6] sm:$0xff]  ;;  %v532_v9 = vcombine.high %v74_v3, %v78_v5  ;;  %v66_v12 = vld [vmem:[#allocation6 + $0x8] sm:$0xff]  ;;  %v79_v17 = vld [vmem:[#allocation6 + $0x70] sm:$0xff]  ;;  %v84_v36 = vshrl.u32 %v83_v35, 7 }
  0x2a   :  { %v69_v8 = vld [vmem:[#allocation6 + $0x20] sm:$0xff]  ;;  %v531_v10 = vcombine.low %v74_v3, %v78_v5  ;;  %v70_v13 = vld [vmem:[#allocation6 + $0x28] sm:$0xff]  ;;  %v76_v18 = vld [vmem:[#allocation6 + $0x58] sm:$0xff]  ;;  %v534_v21 = vcombine.high %v75_v15, %v79_v17  ;;  %v533_v28 = vcombine.low %v75_v15, %v79_v17  ;;  %59 = vst.msk [vmem:[#allocation2] sm:$0xff] %vm58_vm1, %v666_v34 }
  0x2b   :  { %v522_v11 = vcombine.high %v65_v7, %v69_v8  ;;  %224 = vmatprep.subr.bf16.mxu0 %v530_v4  ;;  %v524_v14 = vcombine.high %v66_v12, %v70_v13  ;;  %267 = vmatprep.subr.bf16.mxu1 %v532_v9  ;;  %v521_v16 = vcombine.low %v65_v7, %v69_v8  ;;  %v80_v19 = vld [vmem:[#allocation6 + $0x78] sm:$0xff]  ;;  %v67_v23 = vld [vmem:[#allocation6 + $0x10] sm:$0xff]  ;;  %v85_v37 = vsub.s32 0, %v84_v36  ;;  %v81_v39 = vld [vmem:[#allocation8] sm:$0xff] }
  0x2c   :  { %225 = vmatpush1.bf16.msra.mxu0 %v529_v6  ;;  %268 = vmatpush1.bf16.msra.mxu1 %v531_v10  ;;  %v523_v20 = vcombine.low %v66_v12, %v70_v13  ;;  %v536_v22 = vcombine.high %v76_v18, %v80_v19  ;;  %v71_v24 = vld [vmem:[#allocation6 + $0x30] sm:$0xff]  ;;  %v553_v25 = vld [vmem:[#allocation4] sm:$0xff]   ;;  %v535_v29 = vcombine.low %v76_v18, %v80_v19  ;;  %v93_v38 = vsub.s32 2, %v84_v36 }
  0x2d   :  { %226 = vmatprep.subr.bf16.mxu0 %v522_v11  ;;  %269 = vmatprep.subr.bf16.mxu1 %v524_v14  ;;  %v68_v26 = vld [vmem:[#allocation6 + $0x18] sm:$0xff]  ;;  %v526_v30 = vcombine.high %v67_v23, %v71_v24  ;;  %v525_v32 = vcombine.low %v67_v23, %v71_v24  ;;  %60 = vst.msk [vmem:[#allocation2 + $0x8] sm:$0xff] %vm58_vm1, %v666_v34  ;;  %v89_v40 = vsub.s32 1, %v84_v36  ;;  %v97_v41 = vsub.s32 3, %v84_v36 }
  0x2e   :  { %v72_v27 = vld [vmem:[#allocation6 + $0x38] sm:$0xff]  ;;  %v86_v43 = vrot.slane %v81_v39, %v85_v37  ;;  %v94_v44 = vrot.slane %v81_v39, %v93_v38  ;;  %v101_v46 = vsub.s32 4, %v84_v36  ;;  %v109_v51 = vsub.s32 6, %v84_v36 }
  0x2f   :  { %v528_v31 = vcombine.high %v68_v26, %v72_v27  ;;  %v527_v33 = vcombine.low %v68_v26, %v72_v27  ;;  %v90_v48 = vrot.slane %v81_v39, %v89_v40  ;;  %v98_v49 = vrot.slane %v81_v39, %v97_v41 }
  0x30   :  { %227 = vmatpush1.bf16.msra.mxu0 %v521_v16  ;;  %270 = vmatpush1.bf16.msra.mxu1 %v523_v20  ;;  %v105_v52 = vsub.s32 5, %v84_v36  ;;  %v113_v54 = vsub.s32 7, %v84_v36  ;;  %v102_v58 = vrot.slane %v81_v39, %v101_v46  ;;  %v110_v63 = vrot.slane %v81_v39, %v109_v51 }
  0x31   :  { %310 = vmatprep.subr.bf16.mxu0 %v534_v21  ;;  %353 = vmatprep.subr.bf16.mxu1 %v536_v22  ;;  %v667_v36 = vmov 0.0   ;;  %v753_v37 = vld [vmem:[#allocation2] sm:$0xff] }
  0x32   :  { %v114_v2 = vrot.slane %v81_v39, %v113_v54  ;;  %61 = vst.msk [vmem:[#allocation3] sm:$0xff] %vm58_vm1, %v667_v36  ;;  %62 = vst.msk [vmem:[#allocation3 + $0x8] sm:$0xff] %vm58_vm1, %v667_v36 }
  0x33   :  { %537 = vmatmul.mubr.msk.bf16.vlgmr.msra.gmra.mxu0 %vm208_vm0, %v553_v25  ;;  %538 = vmatmul.mubr.msk.bf16.vlgmr.msra.gmra.mxu1 %vm208_vm0, %v553_v25 }
  0x34   :  { %311 = vmatpush1.bf16.msra.mxu0 %v533_v28  ;;  %354 = vmatpush1.bf16.msra.mxu1 %v535_v29  ;;  %v758_v40 = vld [vmem:[#allocation2 + $0x8] sm:$0xff] }
  0x35   :  { %312 = vmatprep.subr.bf16.mxu0 %v526_v30  ;;  %355 = vmatprep.subr.bf16.mxu1 %v528_v31 }
  0x36   :  { %330 = vmatprep.mubr.bf16.mxu0 %v665_v0  ;;  %373 = vmatprep.mubr.bf16.mxu1 %v665_v0  ;;  %v106_v0 = vrot.slane %v81_v39, %v105_v52 }
  0x38   :  { %313 = vmatpush1.bf16.msra.mxu0 %v525_v32  ;;  %356 = vmatpush1.bf16.msra.mxu1 %v527_v33 }
  0x3b   :  { %539 = vmatmul.mubr.msk.bf16.vlgmr.msra.gmra.mxu0 %vm208_vm0, %v553_v25  ;;  %540 = vmatmul.mubr.msk.bf16.vlgmr.msra.gmra.mxu1 %vm208_vm0, %v553_v25 }
  0xf3   :  { %v246_v42 = vpop.f32.mrf.mxu0  ;;  %v289_v45 = vpop.f32.mrf.mxu1 }
  0xf4   :  { %v703_v55 = vadd.f32 %v246_v42, %v86_v43  ;;  %v705_v56 = vadd.f32 %v289_v45, %v94_v44 }
  0xf5   :  { %v248_v47 = vpop.f32.mrf.mxu0  ;;  %v291_v50 = vpop.f32.mrf.mxu1 }
  0xf6   :  { %v707_v60 = vadd.f32 %v248_v47, %v90_v48  ;;  %v709_v61 = vadd.f32 %v291_v50, %v98_v49  ;;  %v384_v3 = vmax.f32 %v703_v55, %v705_v56 }
  0xf7   :  { %v250_v53 = vpop.f32.mrf.mxu0  ;;  %v293_v57 = vpop.f32.mrf.mxu1 }
  0xf8   :  { %v713_v4 = vadd.f32 %v250_v53, %v86_v43  ;;  %v715_v5 = vadd.f32 %v293_v57, %v94_v44  ;;  %v385_v11 = vmax.f32 %v707_v60, %v709_v61 }
  0xf9   :  { %v252_v59 = vpop.f32.mrf.mxu0  ;;  %v295_v62 = vpop.f32.mrf.mxu1 }
  0xfa   :  { %v719_v8 = vadd.f32 %v252_v59, %v90_v48  ;;  %v721_v9 = vadd.f32 %v295_v62, %v98_v49  ;;  %v393_v17 = vmax.f32 %v713_v4, %v715_v5 }
  0xfb   :  { %v332_v1 = vpop.f32.mrf.mxu0  ;;  %v375_v7 = vpop.f32.mrf.mxu1 }
  0xfc   :  { %v717_v6 = vadd.f32 %v332_v1, %v102_v58  ;;  %v726_v13 = vadd.f32 %v375_v7, %v110_v63  ;;  %v394_v22 = vmax.f32 %v719_v8, %v721_v9 }
  0xfd   :  { %v334_v10 = vpop.f32.mrf.mxu0  ;;  %v377_v15 = vpop.f32.mrf.mxu1 }
  0xfe   :  { %v386_v12 = vmax.f32 %v384_v3, %v717_v6  ;;  %v728_v14 = vadd.f32 %v334_v10, %v106_v0  ;;  %v733_v19 = vadd.f32 %v377_v15, %v114_v2 }
  0xff   :  { %v336_v16 = vpop.f32.mrf.mxu0  ;;  %v379_v21 = vpop.f32.mrf.mxu1 }
 0x100   :  { %v387_v18 = vmax.f32 %v385_v11, %v728_v14  ;;  %v735_v20 = vadd.f32 %v336_v16, %v102_v58  ;;  %v388_v27 = vmax.f32 %v386_v12, %v726_v13  ;;  %v744_v29 = vadd.f32 %v379_v21, %v110_v63 }
 0x101   :  { %v338_v23 = vpop.f32.mrf.mxu0  ;;  %v381_v26 = vpop.f32.mrf.mxu1 }
 0x102   :  { %v395_v24 = vmax.f32 %v393_v17, %v735_v20  ;;  %v740_v25 = vadd.f32 %v338_v23, %v106_v0  ;;  %v389_v28 = vmax.f32 %v387_v18, %v733_v19  ;;  %v747_v31 = vadd.f32 %v381_v26, %v114_v2 }
 0x104   :  { %v396_v30 = vmax.f32 %v394_v22, %v740_v25  ;;  %v390_v32 = vmax.f32 %v388_v27, %v389_v28  ;;  %v397_v33 = vmax.f32 %v395_v24, %v744_v29 }
 0x106   :  { %v398_v34 = vmax.f32 %v396_v30, %v747_v31  ;;  %391 = vmax.xlane.f32.xlu0 %v390_v32 }
 0x108   :  { %v399_v35 = vmax.f32 %v397_v33, %v398_v34 }
 0x10a   :  { %400 = vmax.xlane.f32.xlu0 %v399_v35 }
 0x18f   :  { %v392_v38 = vpop.xlane.xlu0 %391 }
 0x190   :  { %v756_v39 = vmax.f32 %v753_v37, %v392_v38 }
 0x192   :  { %v406_v41 = vsub.f32 %v753_v37, %v756_v39  ;;  %497 = vst.msk [vmem:[#allocation2] sm:$0xff] %vm58_vm1, %v756_v39  ;;  %418 = vperm.xlu1 %551, %v756_v39  }
 0x193   :  { %v401_v42 = vpop.xlane.xlu0 %400 }
 0x194   :  { %v766_v43 = vmax.f32 %v758_v40, %v401_v42 }
 0x196   :  { %v407_v44 = vsub.f32 %v758_v40, %v766_v43  ;;  %498 = vst.msk [vmem:[#allocation2 + $0x8] sm:$0xff] %vm58_vm1, %v766_v43  ;;  %423 = vperm.xlu1 %551, %v766_v43  }
 0x199   :  { %v502_v43 = vld [vmem:[#allocation2] sm:$0xff] }
 0x20d   :  { %v419_v45 = vpop.permute.xlu1 %418 }
 0x20e   :  { %v426_v46 = vsub.f32 %v703_v55, %v419_v45  ;;  %v427_v47 = vsub.f32 %v707_v60, %v419_v45  ;;  %v428_v48 = vsub.f32 %v705_v56, %v419_v45  ;;  %v429_v49 = vsub.f32 %v709_v61, %v419_v45 }
 0x20f   :  { %v430_v52 = vsub.f32 %v717_v6, %v419_v45  ;;  %v431_v56 = vsub.f32 %v728_v14, %v419_v45  ;;  %v432_v2 = vsub.f32 %v726_v13, %v419_v45 }
 0x210   :  { %v442_v50 = vmul.f32 1.442695, %v426_v46  ;;  %v444_v51 = vmul.f32 1.442695, %v427_v47  ;;  %v446_v53 = vmul.f32 1.442695, %v428_v48 }
 0x211   :  { %v448_v54 = vmul.f32 1.442695, %v429_v49  ;;  %v424_v57 = vpop.permute.xlu1 %423  ;;  %v450_v63 = vmul.f32 1.442695, %v430_v52  ;;  %v452_v6 = vmul.f32 1.442695, %v431_v56 }
 0x212   :  { %554 = vpow2.f32 %v442_v50  ;;  %v434_v58 = vsub.f32 %v713_v4, %v424_v57  ;;  %v435_v59 = vsub.f32 %v719_v8, %v424_v57  ;;  %v436_v55 = vsub.f32 %v715_v5, %v424_v57 }
 0x213   :  { %556 = vpow2.f32 %v444_v51  ;;  %v437_v60 = vsub.f32 %v721_v9, %v424_v57  ;;  %v438_v0 = vsub.f32 %v735_v20, %v424_v57  ;;  %v433_v4 = vsub.f32 %v733_v19, %v419_v45 }
 0x214   :  { %v458_v61 = vmul.f32 1.442695, %v434_v58  ;;  %v460_v62 = vmul.f32 1.442695, %v435_v59  ;;  %558 = vpow2.f32 %v446_v53  ;;  %v462_v1 = vmul.f32 1.442695, %v436_v55 }
 0x215   :  { %560 = vpow2.f32 %v448_v54  ;;  %v464_v3 = vmul.f32 1.442695, %v437_v60  ;;  %v439_v5 = vsub.f32 %v740_v25, %v424_v57  ;;  %v466_v7 = vmul.f32 1.442695, %v438_v0  ;;  %v412_v54 = vld [vmem:[#allocation3] sm:$0xff]  ;;  %v413_v55 = vld [vmem:[#allocation3 + $0x8] sm:$0xff] }
 0x216   :  { %562 = vpow2.f32 %v458_v61  ;;  %v454_v8 = vmul.f32 1.442695, %v432_v2  ;;  %v440_v9 = vsub.f32 %v744_v29, %v424_v57  ;;  %v456_v10 = vmul.f32 1.442695, %v433_v4 }
 0x217   :  { %564 = vpow2.f32 %v460_v62  ;;  %v441_v11 = vsub.f32 %v747_v31, %v424_v57  ;;  %v468_v12 = vmul.f32 1.442695, %v439_v5  ;;  %v408_v51 = vmul.f32 1.442695, %v406_v41 }
 0x218   :  { %566 = vpow2.f32 %v450_v63  ;;  %v470_v13 = vmul.f32 1.442695, %v440_v9  ;;  %v410_v52 = vmul.f32 1.442695, %v407_v44 }
 0x219   :  { %568 = vpow2.f32 %v462_v1  ;;  %v472_v16 = vmul.f32 1.442695, %v441_v11  ;;  %v503_v1 = vld [vmem:[#allocation2 + $0x8] sm:$0xff] }
 0x21a   :  { %570 = vpow2.f32 %v464_v3 }
 0x21b   :  { %572 = vpow2.f32 %v452_v6 }
 0x21c   :  { %574 = vpow2.f32 %v466_v7 }
 0x21d   :  { %576 = vpow2.f32 %v454_v8 }
 0x21e   :  { %578 = vpow2.f32 %v456_v10 }
 0x21f   :  { %v555_v14 = vpop.eup %554  ;;  %580 = vpow2.f32 %v468_v12 }
 0x220   :  { %v557_v15 = vpop.eup %556  ;;  %582 = vpow2.f32 %v470_v13 }
 0x221   :  { %v474_v17 = vadd.f32 %v557_v15, %v555_v14  ;;  %v559_v18 = vpop.eup %558  ;;  %584 = vpow2.f32 %v472_v16 }
 0x222   :  { %v561_v19 = vpop.eup %560  ;;  %586 = vpow2.f32 %v408_v51 }
 0x223   :  { %v475_v20 = vadd.f32 %v559_v18, %v474_v17  ;;  %v563_v21 = vpop.eup %562  ;;  %588 = vpow2.f32 %v410_v52 }
 0x224   :  { %v565_v22 = vpop.eup %564 }
 0x225   :  { %v476_v23 = vadd.f32 %v561_v19, %v475_v20  ;;  %v567_v24 = vpop.eup %566  ;;  %v483_v25 = vadd.f32 %v565_v22, %v563_v21 }
 0x226   :  { %v569_v26 = vpop.eup %568 }
 0x227   :  { %v477_v27 = vadd.f32 %v567_v24, %v476_v23  ;;  %v571_v28 = vpop.eup %570  ;;  %v484_v29 = vadd.f32 %v569_v26, %v483_v25 }
 0x228   :  { %v573_v30 = vpop.eup %572 }
 0x229   :  { %v575_v31 = vpop.eup %574  ;;  %v478_v32 = vadd.f32 %v573_v30, %v477_v27  ;;  %v485_v33 = vadd.f32 %v571_v28, %v484_v29 }
 0x22a   :  { %v577_v34 = vpop.eup %576 }
 0x22b   :  { %v579_v35 = vpop.eup %578  ;;  %v479_v36 = vadd.f32 %v577_v34, %v478_v32  ;;  %v486_v38 = vadd.f32 %v575_v31, %v485_v33 }
 0x22c   :  { %v581_v42 = vpop.eup %580 }
 0x22d   :  { %v480_v45 = vadd.f32 %v579_v35, %v479_v36  ;;  %v487_v46 = vadd.f32 %v581_v42, %v486_v38  ;;  %v583_v47 = vpop.eup %582 }
 0x22e   :  { %v585_v49 = vpop.eup %584 }
 0x22f   :  { %481 = vadd.xlane.f32.xlu0 %v480_v45  ;;  %v488_v48 = vadd.f32 %v583_v47, %v487_v46  ;;  %v587_v53 = vpop.eup %586 }
 0x230   :  { %v414_v57 = vmul.f32 %v587_v53, %v412_v54  ;;  %v589_v58 = vpop.eup %588 }
 0x231   :  { %v489_v50 = vadd.f32 %v585_v49, %v488_v48  ;;  %v415_v56 = vmul.f32 %v589_v58, %v413_v55 }
 0x233   :  { %490 = vadd.xlane.f32.xlu1 %v489_v50 }
 0x2b8   :  { %v482_v59 = vpop.xlane.xlu0 %481 }
 0x2b9   :  { %v492_v60 = vadd.f32 %v482_v59, %v414_v57 }
 0x2bb   :  { %495 = vst.msk [vmem:[#allocation3] sm:$0xff] %vm58_vm1, %v492_v60 }
 0x2bc   :  { %v491_v61 = vpop.xlane.xlu1 %490 }
 0x2bd   :  { %v493_v62 = vadd.f32 %v491_v61, %v415_v56 }
 0x2bf   :  { %496 = vst.msk [vmem:[#allocation3 + $0x8] sm:$0xff] %vm58_vm1, %v493_v62 }
 0x2c2   :  { %v504_v37 = vld [vmem:[#allocation3] sm:$0xff] }
 0x2c3   :  { %590 = vlog2.f32 %v504_v37 }
 0x2c6   :  { %v505_v39 = vld [vmem:[#allocation3 + $0x8] sm:$0xff] }
 0x2c7   :  { %592 = vlog2.f32 %v505_v39 }
 0x2d0   :  { %v591_v40 = vpop.eup %590 }
 0x2d1   :  { %v507_v41 = vmul.f32 0.6931472, %v591_v40 }
 0x2d3   :  { %v510_v44 = vadd.f32 %v507_v41, %v502_v43 }
 0x2d4   :  { %v593_v63 = vpop.eup %592 }
 0x2d5   :  { %512 = vst.msk [vmem:[%s808_s3] sm:$0xff] %vm58_vm1, %v510_v44  ;;  %v509_v0 = vmul.f32 0.6931472, %v593_v63 }
 0x2d7   :  { %v511_v2 = vadd.f32 %v509_v0, %v503_v1 }
 0x2d9   :  { %513 = vst.msk [vmem:[%s808_s3 + $0x8] sm:$0xff] %vm58_vm1, %v511_v2 }
 0x2da   :  { %518 = vsyncpa [#allocation5], 1 }
 0x2db   :  { %519 = vsyncpa [#allocation7], 1 }

</bundles_post_ra>
